<compile_context>
chip_gen: v7x
topology: tpu7x:2x2x1
jax: 0.10.0
libtpu: 0.0.40
codegen_flags: <defaults>
</compile_context>

<pallas_src>
import functools

import jax
import jax.numpy as jnp
from jax.experimental import pallas as pl
from jax.experimental.pallas import tpu as pltpu


def _round_up(x, m):
    return ((x + m - 1) // m) * m


def _cdiv(a, b):
    return (a + b - 1) // b


def _physical_vmem_bytes():
    # Conservative fallback = v7x per-TensorCore VMEM (smallest of the targets).
    try:
        return int(pltpu.get_tpu_info().vmem_capacity_bytes)
    except Exception:
        return 64 * 1024 * 1024


def ffn_kernel(x_ref, w1_ref, b1_ref, w2_ref, b2_ref, o_ref, acc_ref,
               *, compute_dtype):
    # grid = (M row tiles ["parallel"], P slabs ["arbitrary"/reduction])
    # x_ref : (tm, Hp)   w1_ref: (Hp, tp)   b1_ref: (1, tp) f32
    # w2_ref: (tp, Hp)   b2_ref: (1, Hp) f32   o_ref: (tm, Hp)
    # acc_ref: (tm, Hp) f32 accumulator living across the P axis.
    p = pl.program_id(1)

    @pl.when(p == 0)
    def _init():
        acc_ref[...] = jnp.zeros_like(acc_ref)

    # Per-tile operand cast (VPU, hidden under MXU slack) — no wrapper HBM pass.
    x = x_ref[...].astype(compute_dtype)

    # fc_1 slab (MXU, f32 accumulation) + bias + ReLU (f32 epilogue).
    h = jnp.dot(x, w1_ref[...], preferred_element_type=jnp.float32)
    h = jnp.maximum(h + b1_ref[...], 0.0)

    # dropout: eval mode == identity.
    # TODO(synk): training-mode dropout needs pltpu.prng_seed + pltpu.prng_random_bits mask.

    # fc_2 partial product, accumulated over P slabs.
    acc_ref[...] += jnp.dot(h.astype(compute_dtype), w2_ref[...],
                            preferred_element_type=jnp.float32)

    @pl.when(p == pl.num_programs(1) - 1)
    def _finalize():
        o_ref[...] = jnp.maximum(acc_ref[...] + b2_ref[...], 0.0).astype(o_ref.dtype)


def positionwise_ffn(x, w1, b1, w2, b2, *, block_m=512, block_p=None,
                     compute_dtype=jnp.bfloat16):
    """relu(fc_2(dropout(relu(fc_1(x))))) with dropout as identity (eval).

    x : [B, S, hid]   w1: [hid, pf]   b1: [pf]   w2: [pf, hid]   b2: [hid]
    compute_dtype: MXU operand dtype (default bf16); accumulation and the
                   bias/ReLU epilogue stay f32. Pass jnp.float32 for exactness.
    """
    B, S, H = x.shape
    P = w1.shape[1]
    M = B * S
    out_dtype = x.dtype
    if compute_dtype is None:
        compute_dtype = x.dtype
    compute_dtype = jnp.dtype(compute_dtype)

    # One-time weight cast only; x is cast per-tile inside the kernel.
    w1 = w1.astype(compute_dtype)
    w2 = w2.astype(compute_dtype)

    # Lane-dense feature dims (multiples of 128). No-op for aligned shapes.
    Hp = _round_up(H, 128)
    Pp0 = _round_up(P, 128)

    # Adaptive row tile: near-equal tiles minimize dead padded rows; rounded to
    # the packed-sublane multiple of the matmul operand dtype.
    sublane = 16 if compute_dtype.itemsize < 4 else 8
    n_m = _cdiv(M, block_m)
    tm = _round_up(_cdiv(M, n_m), sublane)
    Mp = tm * n_m

    itemsize_w = compute_dtype.itemsize
    itemsize_x = jnp.dtype(x.dtype).itemsize
    itemsize_o = jnp.dtype(out_dtype).itemsize
    phys_vmem = _physical_vmem_bytes()

    # Resident-vs-streamed weight decision (double-buffered pipeline footprint).
    act_bytes = (2 * tm * Hp * itemsize_x      # x tiles (double-buffered)
                 + 2 * tm * Hp * itemsize_o    # out tiles (double-buffered)
                 + tm * Hp * 4                 # f32 accumulator scratch
                 + tm * Pp0 * 4)               # f32 h intermediate
    resident_w_bytes = 2 * (2 * Hp * Pp0 * itemsize_w) + 2 * (Pp0 + Hp) * 4
    if block_p is None:
        if resident_w_bytes + act_bytes <= int(0.72 * phys_vmem):
            block_p = Pp0          # W1/W2 stay VMEM-resident (single P step)
        else:
            block_p = 2048         # stream W1/W2 slabs over the P axis (v7x case)
    n_p = _cdiv(Pp0, block_p)
    tp = _round_up(_cdiv(Pp0, n_p), 128)
    Pp = tp * n_p

    x2d = jnp.pad(x.reshape(M, H), ((0, Mp - M), (0, Hp - H)))
    w1p = jnp.pad(w1, ((0, Hp - H), (0, Pp - P)))
    w2p = jnp.pad(w2, ((0, Pp - P), (0, Hp - H)))
    b1p = jnp.pad(b1.astype(jnp.float32), ((0, Pp - P),)).reshape(1, Pp)
    b2p = jnp.pad(b2.astype(jnp.float32), ((0, Hp - H),)).reshape(1, Hp)

    # Explicit scoped-VMEM budget (defaults: 16 MiB v5e / 32 MiB v6e,v7x are too
    # small for resident weights at production H/P), clamped below physical VMEM.
    vmem_need = (2 * tm * Hp * itemsize_x
                 + 2 * tm * Hp * itemsize_o
                 + 2 * (Hp * tp + tp * Hp) * itemsize_w
                 + 2 * (tp + Hp) * 4
                 + tm * Hp * 4
                 + tm * tp * 4)
    vmem_limit = int(vmem_need * 1.25) + (4 << 20)
    vmem_limit = max(vmem_limit, 32 << 20)
    vmem_limit = min(vmem_limit, int(0.9 * phys_vmem))

    weight_reads = n_m if n_p > 1 else 1
    cost = pl.CostEstimate(
        flops=4 * Mp * Hp * Pp,  # two (Mp,*)x(*,*) matmuls
        transcendentals=0,
        bytes_accessed=(Mp * Hp * (itemsize_x + itemsize_o)
                        + weight_reads * 2 * Hp * Pp * itemsize_w
                        + (Pp + Hp) * 4),
    )

    kernel = functools.partial(ffn_kernel, compute_dtype=compute_dtype)

    out2d = pl.pallas_call(
        kernel,
        out_shape=jax.ShapeDtypeStruct((Mp, Hp), out_dtype),
        grid_spec=pltpu.PrefetchScalarGridSpec(
            num_scalar_prefetch=0,
            grid=(n_m, n_p),
            in_specs=[
                pl.BlockSpec((tm, Hp), lambda i, p: (i, 0)),   # x row tile (constant over p)
                pl.BlockSpec((Hp, tp), lambda i, p: (0, p)),   # W1 slab
                pl.BlockSpec((1, tp), lambda i, p: (0, p)),    # b1 slab (f32)
                pl.BlockSpec((tp, Hp), lambda i, p: (p, 0)),   # W2 slab
                pl.BlockSpec((1, Hp), lambda i, p: (0, 0)),    # b2 (f32, constant)
            ],
            out_specs=pl.BlockSpec((tm, Hp), lambda i, p: (i, 0)),
            scratch_shapes=[pltpu.VMEM((tm, Hp), jnp.float32)],
        ),
        compiler_params=pltpu.CompilerParams(
            dimension_semantics=("parallel", "arbitrary"),
            vmem_limit_bytes=vmem_limit,
        ),
        cost_estimate=cost,
    )(x2d, w1p, b1p, w2p, b2p)

    return out2d[:M, :H].reshape(B, S, H)


def _torch_linear_params(key, fan_in, fan_out):
    kw, kb = jax.random.split(key)
    bound = 1.0 / (fan_in ** 0.5)
    w = jax.random.uniform(kw, (fan_in, fan_out), jnp.float32, -bound, bound)
    b = jax.random.uniform(kb, (fan_out,), jnp.float32, -bound, bound)
    return w, b


if __name__ == "__main__":
    # Small shapes consistent with the module: [batch, seq, hid_dim]
    batch, seq, hid_dim, pf_dim = 2, 8, 32, 64
    key = jax.random.PRNGKey(0)
    kx, k1, k2 = jax.random.split(key, 3)

    x = jax.random.normal(kx, (batch, seq, hid_dim), dtype=jnp.float32)
    w1, b1 = _torch_linear_params(k1, hid_dim, pf_dim)
    w2, b2 = _torch_linear_params(k2, pf_dim, hid_dim)

    # Plain JAX reference: relu(fc_2(relu(fc_1(x)))) (dropout = identity in eval)
    ref = jnp.maximum(jnp.maximum(x @ w1 + b1, 0.0) @ w2 + b2, 0.0)

    # 1) Default path: bf16 MXU operands, f32 accumulation — loose check.
    out = positionwise_ffn(x, w1, b1, w2, b2)
    jax.block_until_ready(out)
    assert out.shape == x.shape
    assert jnp.allclose(out.astype(jnp.float32), ref, atol=1e-1, rtol=1e-1), \
        "bf16 mismatch vs reference"

    # 2) f32 operand path — strict check.
    out_f32 = positionwise_ffn(x, w1, b1, w2, b2, compute_dtype=jnp.float32)
    jax.block_until_ready(out_f32)
    assert jnp.allclose(out_f32, ref, atol=1e-5, rtol=1e-5), "f32 mismatch vs reference"

    # 3) Exercise the P-tiled accumulator + multi-row-tile path (strict f32 check).
    pf_big = 256
    k3, k4 = jax.random.split(jax.random.PRNGKey(1))
    w1b, b1b = _torch_linear_params(k3, hid_dim, pf_big)
    w2b, b2b = _torch_linear_params(k4, pf_big, hid_dim)
    ref_b = jnp.maximum(jnp.maximum(x @ w1b + b1b, 0.0) @ w2b + b2b, 0.0)
    out_b = positionwise_ffn(x, w1b, b1b, w2b, b2b, block_m=8, block_p=128,
                             compute_dtype=jnp.float32)
    jax.block_until_ready(out_b)
    assert jnp.allclose(out_b, ref_b, atol=1e-5, rtol=1e-5), \
        "P-tiled accumulator path mismatch vs reference"

    print("KERNEL_OK")
</pallas_src>

<mosaic_0001>
module attributes {stable_mosaic.version = 11 : i64} {
  func.func @ffn_kernel(%arg0: i32, %arg1: i32, %arg2: memref<16x128xf32, #tpu.memory_space<vmem>>, %arg3: memref<128x128xbf16, #tpu.memory_space<vmem>>, %arg4: memref<1x128xf32, #tpu.memory_space<vmem>>, %arg5: memref<128x128xbf16, #tpu.memory_space<vmem>>, %arg6: memref<1x128xf32, #tpu.memory_space<vmem>>, %arg7: memref<16x128xf32, #tpu.memory_space<vmem>>, %arg8: memref<16x128xf32, #tpu.memory_space<vmem>>) attributes {dimension_semantics = [#tpu.dimension_semantics<parallel>, #tpu.dimension_semantics<arbitrary>], iteration_bounds = array<i64: 1, 1>, scalar_prefetch = 0 : i64, scratch_operands = 1 : i64, tpu.core_type = #tpu.core_type<tc>, window_params = [{transform_indices = @transform_0, window_bounds = array<i64: 16, 128>}, {transform_indices = @transform_1, window_bounds = array<i64: 128, 128>}, {transform_indices = @transform_2, window_bounds = array<i64: 1, 128>}, {transform_indices = @transform_3, window_bounds = array<i64: 128, 128>}, {pipeline_mode = #tpu.pipeline_mode<synchronous>, transform_indices = @transform_4, window_bounds = array<i64: 1, 128>}, {transform_indices = @transform_5, window_bounds = array<i64: 16, 128>}]} {
    %c0_i32 = arith.constant 0 : i32
    %0 = arith.cmpi eq, %arg1, %c0_i32 : i32
    %1 = arith.extui %0 : i1 to i32
    %c0_i32_0 = arith.constant 0 : i32
    %2 = arith.cmpi ne, %1, %c0_i32_0 : i32
    scf.if %2 {
      %cst_16 = arith.constant 0.000000e+00 : f32
      %21 = vector.broadcast %cst_16 : f32 to vector<16x128xf32>
      %c0_17 = arith.constant 0 : index
      %c0_18 = arith.constant 0 : index
      %22 = vector.load %arg8[%c0_17, %c0_18] : memref<16x128xf32, #tpu.memory_space<vmem>>, vector<16x128xf32>
      tpu.vector_store %arg8[%c0_17, %c0_18], %21 {strides = array<i32>} : memref<16x128xf32, #tpu.memory_space<vmem>>, vector<16x128xf32>,
    } else {
    }
    %c0 = arith.constant 0 : index
    %c0_1 = arith.constant 0 : index
    %3 = vector.load %arg2[%c0, %c0_1] : memref<16x128xf32, #tpu.memory_space<vmem>>, vector<16x128xf32>
    %4 = arith.truncf %3 : vector<16x128xf32> to vector<16x128xbf16>
    %c0_2 = arith.constant 0 : index
    %c0_3 = arith.constant 0 : index
    %5 = vector.load %arg3[%c0_2, %c0_3] : memref<128x128xbf16, #tpu.memory_space<vmem>>, vector<128x128xbf16>
    %cst = arith.constant dense<0.000000e+00> : vector<16x128xf32>
    %6 = tpu.matmul %4, %5, %cst {dimension_numbers = #tpu.dot_dimension_numbers<[1], [0], [0], [1], [0, 0, 1, 1], [], []>} : vector<16x128xbf16>, vector<128x128xbf16>, vector<16x128xf32> -> vector<16x128xf32>
    %c0_4 = arith.constant 0 : index
    %c0_5 = arith.constant 0 : index
    %7 = vector.load %arg4[%c0_4, %c0_5] : memref<1x128xf32, #tpu.memory_space<vmem>>, vector<1x128xf32>
    %8 = vector.broadcast %7 : vector<1x128xf32> to vector<16x128xf32>
    %9 = arith.addf %6, %8 : vector<16x128xf32>
    %cst_6 = arith.constant 0.000000e+00 : f32
    %10 = vector.broadcast %cst_6 : f32 to vector<16x128xf32>
    %11 = arith.maximumf %9, %10 : vector<16x128xf32>
    %c0_7 = arith.constant 0 : index
    %c0_8 = arith.constant 0 : index
    %12 = vector.load %arg8[%c0_7, %c0_8] : memref<16x128xf32, #tpu.memory_space<vmem>>, vector<16x128xf32>
    %13 = arith.truncf %11 : vector<16x128xf32> to vector<16x128xbf16>
    %c0_9 = arith.constant 0 : index
    %c0_10 = arith.constant 0 : index
    %14 = vector.load %arg5[%c0_9, %c0_10] : memref<128x128xbf16, #tpu.memory_space<vmem>>, vector<128x128xbf16>
    %cst_11 = arith.constant dense<0.000000e+00> : vector<16x128xf32>
    %15 = tpu.matmul %13, %14, %cst_11 {dimension_numbers = #tpu.dot_dimension_numbers<[1], [0], [0], [1], [0, 0, 1, 1], [], []>} : vector<16x128xbf16>, vector<128x128xbf16>, vector<16x128xf32> -> vector<16x128xf32>
    %16 = arith.addf %12, %15 : vector<16x128xf32>
    %c0_12 = arith.constant 0 : index
    %c0_13 = arith.constant 0 : index
    %17 = vector.load %arg8[%c0_12, %c0_13] : memref<16x128xf32, #tpu.memory_space<vmem>>, vector<16x128xf32>
    tpu.vector_store %arg8[%c0_12, %c0_13], %16 {strides = array<i32>} : memref<16x128xf32, #tpu.memory_space<vmem>>, vector<16x128xf32>,
    %c0_i32_14 = arith.constant 0 : i32
    %18 = arith.cmpi eq, %arg1, %c0_i32_14 : i32
    %19 = arith.extui %18 : i1 to i32
    %c0_i32_15 = arith.constant 0 : i32
    %20 = arith.cmpi ne, %19, %c0_i32_15 : i32
    scf.if %20 {
      %c0_16 = arith.constant 0 : index
      %c0_17 = arith.constant 0 : index
      %21 = vector.load %arg8[%c0_16, %c0_17] : memref<16x128xf32, #tpu.memory_space<vmem>>, vector<16x128xf32>
      %c0_18 = arith.constant 0 : index
      %c0_19 = arith.constant 0 : index
      %22 = vector.load %arg6[%c0_18, %c0_19] : memref<1x128xf32, #tpu.memory_space<vmem>>, vector<1x128xf32>
      %23 = vector.broadcast %22 : vector<1x128xf32> to vector<16x128xf32>
      %24 = arith.addf %21, %23 : vector<16x128xf32>
      %cst_20 = arith.constant 0.000000e+00 : f32
      %25 = vector.broadcast %cst_20 : f32 to vector<16x128xf32>
      %26 = arith.maximumf %24, %25 : vector<16x128xf32>
      %c0_21 = arith.constant 0 : index
      %c0_22 = arith.constant 0 : index
      %27 = vector.load %arg7[%c0_21, %c0_22] : memref<16x128xf32, #tpu.memory_space<vmem>>, vector<16x128xf32>
      tpu.vector_store %arg7[%c0_21, %c0_22], %26 {strides = array<i32>} : memref<16x128xf32, #tpu.memory_space<vmem>>, vector<16x128xf32>,
    } else {
    }
    return
  }
  func.func @transform_0(%arg0: i32, %arg1: i32) -> (i32, i32) {
    %c0_i32 = arith.constant 0 : i32
    %c0_i32_0 = arith.constant 0 : i32
    return %arg0, %c0_i32 : i32, i32
  }
  func.func @transform_1(%arg0: i32, %arg1: i32) -> (i32, i32) {
    %c0_i32 = arith.constant 0 : i32
    %c0_i32_0 = arith.constant 0 : i32
    return %c0_i32, %arg1 : i32, i32
  }
  func.func @transform_2(%arg0: i32, %arg1: i32) -> (i32, i32) {
    %c0_i32 = arith.constant 0 : i32
    %c0_i32_0 = arith.constant 0 : i32
    return %c0_i32, %arg1 : i32, i32
  }
  func.func @transform_3(%arg0: i32, %arg1: i32) -> (i32, i32) {
    %c0_i32 = arith.constant 0 : i32
    %c0_i32_0 = arith.constant 0 : i32
    return %arg1, %c0_i32 : i32, i32
  }
  func.func @transform_4(%arg0: i32, %arg1: i32) -> (i32, i32) {
    %c0_i32 = arith.constant 0 : i32
    %c0_i32_0 = arith.constant 0 : i32
    %c0_i32_1 = arith.constant 0 : i32
    return %c0_i32, %c0_i32_0 : i32, i32
  }
  func.func @transform_5(%arg0: i32, %arg1: i32) -> (i32, i32) {
    %c0_i32 = arith.constant 0 : i32
    %c0_i32_0 = arith.constant 0 : i32
    return %arg0, %c0_i32 : i32, i32
  }
}

</mosaic_0001>

<bundles_post_ra>
// kernel: tpu_custom_call.1
= control target key start
LH: loop header
LB: loop body
LE: loop exit
PB: predicated region body
PF: predicated region fallthrough
CT: control target
= control target key end

     0   :  { %10 = vsyncpa [#allocation4], 0  ;;  %s636_s0 = inlined_call_operand.hbm [shape: f32[16,128], index: 0, kind: input, shape index: {}]   ;;  %s637_s1 = inlined_call_operand.hbm [shape: bf16[128,128], index: 1, kind: input, shape index: {}]   ;;  %s638_s2 = inlined_call_operand.vmem [shape: f32[1,128], index: 2, kind: input, shape index: {}]   ;;  %s639_s3 = inlined_call_operand.hbm [shape: bf16[128,128], index: 3, kind: input, shape index: {}]   ;;  %s640_s4 = inlined_call_operand.vmem [shape: f32[1,128], index: 4, kind: input, shape index: {}]   ;;  %s641_s5 = inlined_call_operand.hbm [shape: f32[16,128], index: 5, kind: output, shape index: {}]  }
   0x1   :  { %11 = vsyncpa [#allocation7], 0 }
   0x2   :  { %12 = vsyncpa [#allocation5], 0  ;;  %s530_s18 = smov [#allocation6]   ;;  %s436_s22 = scalar_lea.hbm %s637_s1, 1024 }
   0x3   :  { %s30_s19 = sshll.u32 %s530_s18, 4  ;;  %p437_p0 = scmp.ne.s32.totalorder %s637_s1, %s436_s22  ;;  %s31_s19 = int_to_ptr.vmem [resolvable:$true] %s30_s19 }
   0x4   :  { %p440_p1 = scmp.lt.u32.totalorder %s436_s22, %s637_s1 }
   0x6   :  { %p442_p2 = pnand %p440_p1, %p437_p0 }
   0x8   :  { %445 = shalt.err (!%p442_p2)
}
   0x9   :  { %s446_s27 = scalar_lea.vmem %s31_s19, 1024  ;;  %p451_p4 = scmp.lt.s32.totalorder %s31_s19, %s31_s19 }
   0xa   :  { %p447_p3 = scmp.ne.s32.totalorder %s31_s19, %s446_s27  ;;  %p452_p5 = scmp.lt.s32.totalorder %s446_s27, %s446_s27 }
   0xc   :  { %p453_p6 = por %p452_p5, %p451_p4 }
   0xe   :  { %p454_p7 = pnand %p453_p6, %p447_p3 }
  0x10   :  { %457 = shalt.err (!%p454_p7)
}
  0x11   :  { %s531_s28 = smov 64   ;;  %s532_s29 = smov 4  }
  0x12   :  { %36 = dma.hbm_to_vmem [thread:$0]  %s637_s1, 1024, %s31_s19, [#allocation7], %s531_s28, %s531_s28, %s532_s29  }
  0x13   :  { %s533_s7 = smov [#allocation3]   ;;  %s458_s11 = scalar_lea.hbm %s636_s0, 256 }
  0x14   :  { %s18_s8 = sshll.u32 %s533_s7, 4  ;;  %p459_p8 = scmp.ne.s32.totalorder %s636_s0, %s458_s11  ;;  %s19_s8 = int_to_ptr.vmem [resolvable:$true] %s18_s8 }
  0x15   :  { %p462_p9 = scmp.lt.u32.totalorder %s458_s11, %s636_s0 }
  0x17   :  { %p464_p10 = pnand %p462_p9, %p459_p8 }
  0x19   :  { %467 = shalt.err (!%p464_p10)
}
  0x1a   :  { %s468_s16 = scalar_lea.vmem %s19_s8, 256  ;;  %p473_p12 = scmp.lt.s32.totalorder %s19_s8, %s19_s8 }
  0x1b   :  { %p469_p11 = scmp.ne.s32.totalorder %s19_s8, %s468_s16  ;;  %p474_p13 = scmp.lt.s32.totalorder %s468_s16, %s468_s16 }
  0x1d   :  { %p475_p0 = por %p474_p13, %p473_p12 }
  0x1f   :  { %p476_p1 = pnand %p475_p0, %p469_p11 }
  0x21   :  { %479 = shalt.err (!%p476_p1)
}
  0x22   :  { %s534_s1 = smov 128   ;;  %s535_s17 = smov 8  }
  0x23   :  { %24 = dma.hbm_to_vmem [thread:$0]  %s636_s0, 256, %s19_s8, [#allocation4], %s534_s1, %s534_s1, %s535_s17  }
  0x24   :  { %s536_s20 = smov [#allocation8]   ;;  %s480_s24 = scalar_lea.hbm %s639_s3, 1024 }
  0x25   :  { %s44_s21 = sshll.u32 %s536_s20, 4  ;;  %p481_p2 = scmp.ne.s32.totalorder %s639_s3, %s480_s24  ;;  %s45_s21 = int_to_ptr.vmem [resolvable:$true] %s44_s21 }
  0x26   :  { %p484_p3 = scmp.lt.u32.totalorder %s480_s24, %s639_s3 }
  0x28   :  { %p486_p4 = pnand %p484_p3, %p481_p2 }
  0x2a   :  { %489 = shalt.err (!%p486_p4)
}
  0x2b   :  { %s490_s6 = scalar_lea.vmem %s45_s21, 1024  ;;  %p495_p6 = scmp.lt.s32.totalorder %s45_s21, %s45_s21 }
  0x2c   :  { %p491_p5 = scmp.ne.s32.totalorder %s45_s21, %s490_s6  ;;  %p496_p7 = scmp.lt.s32.totalorder %s490_s6, %s490_s6 }
  0x2e   :  { %p497_p8 = por %p496_p7, %p495_p6 }
  0x30   :  { %p498_p9 = pnand %p497_p8, %p491_p5 }
  0x32   :  { %501 = shalt.err (!%p498_p9)
}
  0x33   :  { %50 = dma.hbm_to_vmem [thread:$0]  %s639_s3, 1024, %s45_s21, [#allocation7], %s531_s28, %s531_s28, %s532_s29  }
  0x34   :  { %524 = dma.done.wait [#allocation4], 256  }
  0x35   :  { %525 = vsyncadd [#allocation4], 4294967040 }
  0x36   :  { %526 = dma.done.wait [#allocation7], 2048  }
  0x37   :  { %527 = vsyncadd [#allocation7], 4294965248  ;;  %v537_v0 = vmov 0.0   ;;  %vm538_vm0 = vmmov 0   ;;  %v420_v1 = vld [vmem:[#allocation6] sm:$0xff]   ;;  %v421_v2 = vld [vmem:[#allocation6 + $0x8] sm:$0xff]  }
  0x38   :  { %370 = vmatprep.subr.bf16.mxu0 %v537_v0  ;;  %386 = vmatprep.mubr.msk.bf16.mxu0 %vm538_vm0, %v537_v0  ;;  %v422_v3 = vld [vmem:[#allocation6 + $0x10] sm:$0xff]   ;;  %v428_v4 = vld [vmem:[#allocation8] sm:$0xff]   ;;  %v423_v5 = vld [vmem:[#allocation6 + $0x18] sm:$0xff]   ;;  %s539_s9 = smov [#allocation9]  }
  0x39   :  { %390 = vmatprep.subr.bf16.mxu1 %v537_v0  ;;  %406 = vmatprep.mubr.msk.bf16.mxu1 %vm538_vm0, %v537_v0  ;;  %v429_v6 = vld [vmem:[#allocation8 + $0x8] sm:$0xff]   ;;  %v424_v7 = vld [vmem:[#allocation6 + $0x20] sm:$0xff]   ;;  %v430_v8 = vld [vmem:[#allocation8 + $0x10] sm:$0xff]  }
  0x3a   :  { %371 = vmatpush3.bf16.msra.mxu0 %v420_v1  ;;  %391 = vmatpush3.bf16.msra.mxu1 %v428_v4  ;;  %v425_v9 = vld [vmem:[#allocation6 + $0x28] sm:$0xff]   ;;  %v431_v10 = vld [vmem:[#allocation8 + $0x18] sm:$0xff]   ;;  %v426_v11 = vld [vmem:[#allocation6 + $0x30] sm:$0xff]  }
  0x3b   :  { %372 = vmatprep.subr.bf16.mxu0 %v537_v0  ;;  %392 = vmatprep.subr.bf16.mxu1 %v537_v0  ;;  %v432_v12 = vld [vmem:[#allocation8 + $0x20] sm:$0xff]   ;;  %v427_v13 = vld [vmem:[#allocation6 + $0x38] sm:$0xff]   ;;  %v69_v14 = vld [vmem:[#allocation3] sm:$0xff] }
  0x3c   :  { %v70_v15 = vld [vmem:[#allocation3 + $0x8] sm:$0xff]  ;;  %v433_v16 = vld [vmem:[#allocation8 + $0x28] sm:$0xff]   ;;  %v434_v18 = vld [vmem:[#allocation8 + $0x30] sm:$0xff]  }
  0x3d   :  { %v71_v17 = vpack.c.bf16 %v70_v15, %v69_v14  ;;  %v435_v19 = vld [vmem:[#allocation8 + $0x38] sm:$0xff]   ;;  %v334_v20 = vld [vmem:[%s638_s2] ss:$0 sm:$0xff]  ;;  %s321_s2 = sshll.u32 %s539_s9, 4  ;;  %s322_s2 = int_to_ptr.vmem [resolvable:$true] %s321_s2 }
  0x3e   :  { %373 = vmatpush3.bf16.msra.mxu0 %v421_v2  ;;  %393 = vmatpush3.bf16.msra.mxu1 %v429_v6  ;;  %v351_v30 = vld [vmem:[%s640_s4] ss:$0 sm:$0xff]  ;;  %s502_s10 = scalar_lea.vmem %s322_s2, 256  ;;  %p507_p11 = scmp.lt.s32.totalorder %s322_s2, %s322_s2 }
  0x3f   :  { %374 = vmatprep.subr.bf16.mxu0 %v537_v0  ;;  %394 = vmatprep.subr.bf16.mxu1 %v537_v0  ;;  %p503_p10 = scmp.ne.s32.totalorder %s322_s2, %s502_s10  ;;  %p508_p12 = scmp.lt.s32.totalorder %s502_s10, %s502_s10 }
  0x41   :  { %p509_p13 = por %p508_p12, %p507_p11 }
  0x42   :  { %375 = vmatpush3.bf16.msra.mxu0 %v422_v3  ;;  %395 = vmatpush3.bf16.msra.mxu1 %v430_v8 }
  0x43   :  { %376 = vmatprep.subr.bf16.mxu0 %v537_v0  ;;  %396 = vmatprep.subr.bf16.mxu1 %v537_v0  ;;  %p510_p0 = pnand %p509_p13, %p503_p10 }
  0x46   :  { %377 = vmatpush3.bf16.msra.mxu0 %v423_v5  ;;  %397 = vmatpush3.bf16.msra.mxu1 %v431_v10 }
  0x47   :  { %378 = vmatprep.subr.bf16.mxu0 %v537_v0  ;;  %398 = vmatprep.subr.bf16.mxu1 %v537_v0 }
  0x4a   :  { %379 = vmatpush3.bf16.msra.mxu0 %v424_v7  ;;  %399 = vmatpush3.bf16.msra.mxu1 %v432_v12 }
  0x4b   :  { %380 = vmatprep.subr.bf16.mxu0 %v537_v0  ;;  %400 = vmatprep.subr.bf16.mxu1 %v537_v0 }
  0x4e   :  { %381 = vmatpush3.bf16.msra.mxu0 %v425_v9  ;;  %401 = vmatpush3.bf16.msra.mxu1 %v433_v16 }
  0x4f   :  { %382 = vmatprep.subr.bf16.mxu0 %v537_v0  ;;  %402 = vmatprep.subr.bf16.mxu1 %v537_v0 }
  0x52   :  { %383 = vmatpush3.bf16.msra.mxu0 %v426_v11  ;;  %403 = vmatpush3.bf16.msra.mxu1 %v434_v18 }
  0x53   :  { %384 = vmatprep.subr.bf16.mxu0 %v537_v0  ;;  %404 = vmatprep.subr.bf16.mxu1 %v537_v0 }
  0x56   :  { %385 = vmatpush3.bf16.msra.mxu0 %v427_v13  ;;  %405 = vmatpush3.bf16.msra.mxu1 %v435_v19 }
  0x59   :  { %387 = vmatmul.mubr.bf16.vlgmr.msra.gmra.mrb[0].mxu0 %v71_v17 }
 0x12c   :  { %v177_v21 = vpop.f32.mrb[0].mxu0 }
 0x12d   :  { %v178_v22 = vadd.f32 %v334_v20, %v177_v21  ;;  %v388_v23 = vpop.f32.mrb[1].mxu0 }
 0x12e   :  { %v180_v24 = vpop.f32.mrb[2].mxu0 }
 0x12f   :  { %v181_v25 = vadd.f32 %v334_v20, %v180_v24  ;;  %v389_v26 = vpop.f32.mrb[3].mxu0  ;;  %v184_v27 = vmax.f32 %v178_v22, 0.0 }
 0x131   :  { %v185_v28 = vmax.f32 %v181_v25, 0.0 }
 0x133   :  { %v188_v29 = vpack.c.bf16 %v185_v28, %v184_v27 }
 0x135   :  { %407 = vmatmul.mubr.bf16.vlgmr.msra.gmra.mrb[0].mxu1 %v188_v29 }
 0x208   :  { %v287_v31 = vpop.f32.mrb[0].mxu1 }
 0x209   :  { %v310_v32 = vadd.f32 %v351_v30, %v287_v31  ;;  %v408_v33 = vpop.f32.mrb[1].mxu1 }
 0x20a   :  { %v290_v34 = vpop.f32.mrb[2].mxu1 }
 0x20b   :  { %v312_v35 = vmax.f32 %v310_v32, 0.0  ;;  %v311_v36 = vadd.f32 %v351_v30, %v290_v34  ;;  %v409_v37 = vpop.f32.mrb[3].mxu1 }
 0x20d   :  { %314 = vst [vmem:[#allocation9] sm:$0xff] %v312_v35  ;;  %v313_v38 = vmax.f32 %v311_v36, 0.0 }
 0x20f   :  { %315 = vst [vmem:[#allocation9 + $0x8] sm:$0xff] %v313_v38 }
 0x210   :  { %513 = shalt.err (!%p510_p0)
}
 0x211   :  { %s514_s12 = scalar_lea.hbm %s641_s5, 256 }
 0x212   :  { %p515_p1 = scmp.ne.s32.totalorder %s641_s5, %s514_s12  ;;  %p518_p2 = scmp.lt.u32.totalorder %s514_s12, %s641_s5 }
 0x214   :  { %p520_p3 = pnand %p518_p2, %p515_p1 }
 0x216   :  { %523 = shalt.err (!%p520_p3)
}
 0x217   :  { %327 = dma.vmem_to_hbm [thread:$0]  %s322_s2, 256, %s641_s5, [#allocation5], %s534_s1, %s534_s1, %s535_s17  }
 0x218   :  { %528 = dma.done.wait [#allocation5], 256  }
 0x219   :  { %529 = vsyncadd [#allocation5], 4294967040 }
 0x21a   :  { %331 = vsyncpa [#allocation4], 1 }
 0x21b   :  { %332 = vsyncpa [#allocation7], 1 }
 0x21c   :  { %333 = vsyncpa [#allocation5], 1 }

</bundles_post_ra>
